<compile_context>
chip_gen: v6e
topology: v6e:2x2x1
jax: 0.10.0
libtpu: 0.0.40
codegen_flags: <defaults>
</compile_context>

<pallas_src>
import functools

import jax
import jax.numpy as jnp
from jax.experimental import pallas as pl
from jax.experimental.pallas import tpu as pltpu

LN_EPS = 1e-5
LANE = 128


def _round_up(n, m):
    return ((n + m - 1) // m) * m


def _layernorm_padded(x, gamma, beta, d_real):
    """LayerNorm over the first `d_real` channels of a lane-padded tile.

    Requires: padded channels of `x` are exactly zero (so sum(x) / sum(x*x) over
    all lanes equal the sums over the real channels) and gamma/beta are zero in
    the padded channels (so the output stays zero there).
    """
    inv_d = 1.0 / float(d_real)
    s = jnp.sum(x, axis=-1, keepdims=True)
    ss = jnp.sum(x * x, axis=-1, keepdims=True)
    mean = s * inv_d
    var = ss * inv_d - mean * mean
    xhat = (x - mean) * jax.lax.rsqrt(var + LN_EPS)
    return xhat * gamma + beta


# -------------------- kernels --------------------

def _stage1_kernel(x_ref, w1_ref, b1_ref, g1_ref, be1_ref, o_ref, *, d_real):
    # out = x + LayerNorm(x) @ W1 + b1        (center is None path)
    x = x_ref[...].astype(jnp.float32)                                  # (TR, Dp)
    h1 = _layernorm_padded(x,
                           g1_ref[...].astype(jnp.float32),
                           be1_ref[...].astype(jnp.float32), d_real)
    mix = jnp.dot(h1, w1_ref[...], preferred_element_type=jnp.float32) \
        + b1_ref[...].astype(jnp.float32)
    o_ref[...] = (x + mix).astype(o_ref.dtype)


def _fused_kernel(x_ref, c_ref,
                  w1_ref, b1_ref, g1_ref, be1_ref,
                  w2c_ref, b2_ref, g2_ref, be2_ref,
                  o_ref, cat_ref, *, d_real, dp):
    # stage 1: h = x + LN1(x) @ W1 + b1
    x = x_ref[...].astype(jnp.float32)                                  # (TR, Dp)
    c = c_ref[...].astype(jnp.float32)                                  # (TR, Dp)
    h1 = _layernorm_padded(x,
                           g1_ref[...].astype(jnp.float32),
                           be1_ref[...].astype(jnp.float32), d_real)
    h = x + jnp.dot(h1, w1_ref[...], preferred_element_type=jnp.float32) \
          + b1_ref[...].astype(jnp.float32)

    # stage 2: out = h + [LN2(h), center] @ [W2; Wc] + b2   (single MXU pass)
    h2 = _layernorm_padded(h,
                           g2_ref[...].astype(jnp.float32),
                           be2_ref[...].astype(jnp.float32), d_real)
    cat_ref[:, :dp] = h2
    cat_ref[:, dp:] = c
    mix2 = jnp.dot(cat_ref[...], w2c_ref[...], preferred_element_type=jnp.float32) \
         + b2_ref[...].astype(jnp.float32)
    o_ref[...] = (h + mix2).astype(o_ref.dtype)


# -------------------- wrapper --------------------

def _pad_params(params, D, Dp):
    pw = lambda w: jnp.pad(w, ((0, Dp - D), (0, Dp - D)))
    pv = lambda v: jnp.pad(v, ((0, 0), (0, Dp - D)))
    padded = {
        "w1": pw(params["w1"]),
        "b1": pv(params["b1"]),
        "g1": pv(params["g1"]),
        "be1": pv(params["be1"]),
    }
    if "w2" in params:
        # concat [W2; Wc] along K so stage-2 becomes a single (TR,2Dp)@(2Dp,Dp) dot
        padded["w2c"] = jnp.concatenate([pw(params["w2"]), pw(params["wc"])], axis=0)
        padded["b2"] = pv(params["b2"])
        padded["g2"] = pv(params["g2"])
        padded["be2"] = pv(params["be2"])
    return padded


def _vmem_limit_bytes(tr, dp, fused):
    """Rough VMEM budget (double-buffered row tiles + weights + scratch)."""
    row = tr * dp * 4
    n_row_bufs = 3 if fused else 2               # x, (center), out
    weights = dp * dp * 4 * (3 if fused else 1)  # W1 (+ [W2;Wc] = 2*Dp rows)
    vecs = dp * 4 * (6 if fused else 3)
    scratch = tr * 2 * dp * 4 if fused else 0
    est = 2 * n_row_bufs * row + 2 * weights + 2 * vecs + scratch
    # stay >= the 32 MiB scoped default, leave headroom, cap below physical VMEM
    return int(min(max(int(est * 1.5) + (4 << 20), 32 << 20), 100 << 20))


def block_forward(x, params, center=None, row_tile=256):
    """Block forward. x / center: (B, L, D)."""
    B, L, D = x.shape
    R = B * L
    Dp = _round_up(D, LANE)                   # lane-dense channel dim
    tr = min(row_tile, _round_up(R, 8))       # rows per grid step (multiple of 8)
    Rp = _round_up(R, tr)                     # no R % tr restriction
    grid = (Rp // tr,)

    x2 = jnp.pad(x.reshape(R, D), ((0, Rp - R), (0, Dp - D)))
    p = _pad_params(params, D, Dp)

    row_spec = pl.BlockSpec((tr, Dp), lambda i: (i, 0))
    w_spec = pl.BlockSpec((Dp, Dp), lambda i: (0, 0))
    w2c_spec = pl.BlockSpec((2 * Dp, Dp), lambda i: (0, 0))
    vec_spec = pl.BlockSpec((1, Dp), lambda i: (0, 0))

    if center is None:
        kernel = functools.partial(_stage1_kernel, d_real=D)
        out = pl.pallas_call(
            kernel,
            out_shape=jax.ShapeDtypeStruct((Rp, Dp), x.dtype),
            grid_spec=pltpu.PrefetchScalarGridSpec(
                num_scalar_prefetch=0,
                grid=grid,
                in_specs=[row_spec, w_spec, vec_spec, vec_spec, vec_spec],
                out_specs=row_spec,
            ),
            compiler_params=pltpu.CompilerParams(
                dimension_semantics=("parallel",),
                vmem_limit_bytes=_vmem_limit_bytes(tr, Dp, fused=False),
            ),
        )(x2, p["w1"], p["b1"], p["g1"], p["be1"])
    else:
        c2 = jnp.pad(center.reshape(R, D), ((0, Rp - R), (0, Dp - D)))
        kernel = functools.partial(_fused_kernel, d_real=D, dp=Dp)
        out = pl.pallas_call(
            kernel,
            out_shape=jax.ShapeDtypeStruct((Rp, Dp), x.dtype),
            grid_spec=pltpu.PrefetchScalarGridSpec(
                num_scalar_prefetch=0,
                grid=grid,
                in_specs=[row_spec, row_spec,
                          w_spec, vec_spec, vec_spec, vec_spec,
                          w2c_spec, vec_spec, vec_spec, vec_spec],
                out_specs=row_spec,
                scratch_shapes=[pltpu.VMEM((tr, 2 * Dp), jnp.float32)],
            ),
            compiler_params=pltpu.CompilerParams(
                dimension_semantics=("parallel",),
                vmem_limit_bytes=_vmem_limit_bytes(tr, Dp, fused=True),
            ),
        )(x2, c2, p["w1"], p["b1"], p["g1"], p["be1"],
          p["w2c"], p["b2"], p["g2"], p["be2"])

    return out[:R, :D].reshape(B, L, D)


# -------------------- params / reference / test --------------------

def init_params(dim, key, dtype=jnp.float32):
    # dtype=jnp.bfloat16 halves weight DMA bytes; the kernel accumulates in f32.
    ks = jax.random.split(key, 4)
    s = 1.0 / jnp.sqrt(dim)
    return {
        "w1": jax.random.uniform(ks[0], (dim, dim), jnp.float32, -s, s).astype(dtype),
        "b1": jnp.zeros((1, dim), dtype),
        "g1": jnp.ones((1, dim), dtype),     # norm.weight
        "be1": jnp.zeros((1, dim), dtype),   # norm.bias
        "w2": jax.random.uniform(ks[1], (dim, dim), jnp.float32, -s, s).astype(dtype),
        "wc": jax.random.uniform(ks[2], (dim, dim), jnp.float32, -s, s).astype(dtype),
        "b2": jnp.zeros((1, dim), dtype),
        "g2": jnp.ones((1, dim), dtype),     # norm2.weight
        "be2": jnp.zeros((1, dim), dtype),   # norm2.bias
    }


def _ref_ln(x, gamma, beta):
    mean = jnp.mean(x, axis=-1, keepdims=True)
    var = jnp.mean((x - mean) ** 2, axis=-1, keepdims=True)
    return (x - mean) * jax.lax.rsqrt(var + LN_EPS) * gamma + beta


def _reference(x, params, center):
    # pure-JAX reference of the same Block forward (all f32)
    xf = x.astype(jnp.float32)
    h1 = _ref_ln(xf, params["g1"][0].astype(jnp.float32),
                 params["be1"][0].astype(jnp.float32))
    h = xf + (h1 @ params["w1"].astype(jnp.float32) + params["b1"][0].astype(jnp.float32))
    if center is not None:
        cf = center.astype(jnp.float32)
        h2 = _ref_ln(h, params["g2"][0].astype(jnp.float32),
                     params["be2"][0].astype(jnp.float32))
        h = h + (h2 @ params["w2"].astype(jnp.float32)
                 + cf @ params["wc"].astype(jnp.float32)
                 + params["b2"][0].astype(jnp.float32))
    return h


if __name__ == "__main__":
    key = jax.random.PRNGKey(0)
    k_x, k_c, k_p = jax.random.split(key, 3)

    B, L, D = 2, 8, 32
    x = jax.random.normal(k_x, (B, L, D), jnp.float32)
    center = jax.random.normal(k_c, (B, L, D), jnp.float32)
    params = init_params(D, k_p)

    out = jax.block_until_ready(block_forward(x, params, center=center))
    ref = _reference(x, params, center)
    assert out.shape == (B, L, D)
    assert jnp.allclose(out, ref, atol=2e-4, rtol=2e-4), "mismatch vs JAX reference"

    # also exercise the center=None path
    out_nc = jax.block_until_ready(block_forward(x, params, center=None))
    assert jnp.allclose(out_nc, _reference(x, params, None), atol=2e-4, rtol=2e-4)

    print("KERNEL_OK")
</pallas_src>

<mosaic_0001>
module attributes {stable_mosaic.version = 11 : i64} {
  func.func @_fused_kernel(%arg0: i32, %arg1: memref<16x128xf32, #tpu.memory_space<vmem>>, %arg2: memref<16x128xf32, #tpu.memory_space<vmem>>, %arg3: memref<128x128xf32, #tpu.memory_space<vmem>>, %arg4: memref<1x128xf32, #tpu.memory_space<vmem>>, %arg5: memref<1x128xf32, #tpu.memory_space<vmem>>, %arg6: memref<1x128xf32, #tpu.memory_space<vmem>>, %arg7: memref<256x128xf32, #tpu.memory_space<vmem>>, %arg8: memref<1x128xf32, #tpu.memory_space<vmem>>, %arg9: memref<1x128xf32, #tpu.memory_space<vmem>>, %arg10: memref<1x128xf32, #tpu.memory_space<vmem>>, %arg11: memref<16x128xf32, #tpu.memory_space<vmem>>, %arg12: memref<16x256xf32, #tpu.memory_space<vmem>>) attributes {dimension_semantics = [#tpu.dimension_semantics<parallel>], iteration_bounds = array<i64: 1>, scalar_prefetch = 0 : i64, scratch_operands = 1 : i64, tpu.core_type = #tpu.core_type<tc>, window_params = [{transform_indices = @transform_0, window_bounds = array<i64: 16, 128>}, {transform_indices = @transform_1, window_bounds = array<i64: 16, 128>}, {pipeline_mode = #tpu.pipeline_mode<synchronous>, transform_indices = @transform_2, window_bounds = array<i64: 128, 128>}, {pipeline_mode = #tpu.pipeline_mode<synchronous>, transform_indices = @transform_3, window_bounds = array<i64: 1, 128>}, {pipeline_mode = #tpu.pipeline_mode<synchronous>, transform_indices = @transform_4, window_bounds = array<i64: 1, 128>}, {pipeline_mode = #tpu.pipeline_mode<synchronous>, transform_indices = @transform_5, window_bounds = array<i64: 1, 128>}, {pipeline_mode = #tpu.pipeline_mode<synchronous>, transform_indices = @transform_6, window_bounds = array<i64: 256, 128>}, {pipeline_mode = #tpu.pipeline_mode<synchronous>, transform_indices = @transform_7, window_bounds = array<i64: 1, 128>}, {pipeline_mode = #tpu.pipeline_mode<synchronous>, transform_indices = @transform_8, window_bounds = array<i64: 1, 128>}, {pipeline_mode = #tpu.pipeline_mode<synchronous>, transform_indices = @transform_9, window_bounds = array<i64: 1, 128>}, {transform_indices = @transform_10, window_bounds = array<i64: 16, 128>}]} {
    %c0 = arith.constant 0 : index
    %c0_0 = arith.constant 0 : index
    %0 = vector.load %arg1[%c0, %c0_0] : memref<16x128xf32, #tpu.memory_space<vmem>>, vector<16x128xf32>
    %c0_1 = arith.constant 0 : index
    %c0_2 = arith.constant 0 : index
    %1 = vector.load %arg2[%c0_1, %c0_2] : memref<16x128xf32, #tpu.memory_space<vmem>>, vector<16x128xf32>
    %c0_3 = arith.constant 0 : index
    %c0_4 = arith.constant 0 : index
    %2 = vector.load %arg5[%c0_3, %c0_4] : memref<1x128xf32, #tpu.memory_space<vmem>>, vector<1x128xf32>
    %c0_5 = arith.constant 0 : index
    %c0_6 = arith.constant 0 : index
    %3 = vector.load %arg6[%c0_5, %c0_6] : memref<1x128xf32, #tpu.memory_space<vmem>>, vector<1x128xf32>
    %cst = arith.constant dense<0.000000e+00> : vector<16xf32>
    %4 = vector.multi_reduction <add>, %0, %cst [1] : vector<16x128xf32> to vector<16xf32>
    %5 = vector.shape_cast %4 : vector<16xf32> to vector<16x1xf32>
    %6 = arith.mulf %0, %0 : vector<16x128xf32>
    %cst_7 = arith.constant dense<0.000000e+00> : vector<16xf32>
    %7 = vector.multi_reduction <add>, %6, %cst_7 [1] : vector<16x128xf32> to vector<16xf32>
    %8 = vector.shape_cast %7 : vector<16xf32> to vector<16x1xf32>
    %cst_8 = arith.constant 3.125000e-02 : f32
    %9 = vector.broadcast %cst_8 : f32 to vector<16x1xf32>
    %10 = arith.mulf %5, %9 : vector<16x1xf32>
    %cst_9 = arith.constant 3.125000e-02 : f32
    %11 = vector.broadcast %cst_9 : f32 to vector<16x1xf32>
    %12 = arith.mulf %8, %11 : vector<16x1xf32>
    %13 = arith.mulf %10, %10 : vector<16x1xf32>
    %14 = arith.subf %12, %13 : vector<16x1xf32>
    %15 = vector.broadcast %10 : vector<16x1xf32> to vector<16x128xf32>
    %16 = arith.subf %0, %15 : vector<16x128xf32>
    %cst_10 = arith.constant 9.99999974E-6 : f32
    %17 = vector.broadcast %cst_10 : f32 to vector<16x1xf32>
    %18 = arith.addf %14, %17 : vector<16x1xf32>
    %19 = math.rsqrt %18 : vector<16x1xf32>
    %20 = vector.broadcast %19 : vector<16x1xf32> to vector<16x128xf32>
    %21 = arith.mulf %16, %20 : vector<16x128xf32>
    %22 = vector.broadcast %2 : vector<1x128xf32> to vector<16x128xf32>
    %23 = arith.mulf %21, %22 : vector<16x128xf32>
    %24 = vector.broadcast %3 : vector<1x128xf32> to vector<16x128xf32>
    %25 = arith.addf %23, %24 : vector<16x128xf32>
    %c0_11 = arith.constant 0 : index
    %c0_12 = arith.constant 0 : index
    %26 = vector.load %arg3[%c0_11, %c0_12] : memref<128x128xf32, #tpu.memory_space<vmem>>, vector<128x128xf32>
    %cst_13 = arith.constant dense<0.000000e+00> : vector<16x128xf32>
    %27 = tpu.matmul %25, %26, %cst_13 {dimension_numbers = #tpu.dot_dimension_numbers<[1], [0], [0], [1], [0, 0, 1, 1], [], []>} : vector<16x128xf32>, vector<128x128xf32>, vector<16x128xf32> -> vector<16x128xf32>
    %28 = arith.addf %0, %27 : vector<16x128xf32>
    %c0_14 = arith.constant 0 : index
    %c0_15 = arith.constant 0 : index
    %29 = vector.load %arg4[%c0_14, %c0_15] : memref<1x128xf32, #tpu.memory_space<vmem>>, vector<1x128xf32>
    %30 = vector.broadcast %29 : vector<1x128xf32> to vector<16x128xf32>
    %31 = arith.addf %28, %30 : vector<16x128xf32>
    %c0_16 = arith.constant 0 : index
    %c0_17 = arith.constant 0 : index
    %32 = vector.load %arg9[%c0_16, %c0_17] : memref<1x128xf32, #tpu.memory_space<vmem>>, vector<1x128xf32>
    %c0_18 = arith.constant 0 : index
    %c0_19 = arith.constant 0 : index
    %33 = vector.load %arg10[%c0_18, %c0_19] : memref<1x128xf32, #tpu.memory_space<vmem>>, vector<1x128xf32>
    %cst_20 = arith.constant dense<0.000000e+00> : vector<16xf32>
    %34 = vector.multi_reduction <add>, %31, %cst_20 [1] : vector<16x128xf32> to vector<16xf32>
    %35 = vector.shape_cast %34 : vector<16xf32> to vector<16x1xf32>
    %36 = arith.mulf %31, %31 : vector<16x128xf32>
    %cst_21 = arith.constant dense<0.000000e+00> : vector<16xf32>
    %37 = vector.multi_reduction <add>, %36, %cst_21 [1] : vector<16x128xf32> to vector<16xf32>
    %38 = vector.shape_cast %37 : vector<16xf32> to vector<16x1xf32>
    %cst_22 = arith.constant 3.125000e-02 : f32
    %39 = vector.broadcast %cst_22 : f32 to vector<16x1xf32>
    %40 = arith.mulf %35, %39 : vector<16x1xf32>
    %cst_23 = arith.constant 3.125000e-02 : f32
    %41 = vector.broadcast %cst_23 : f32 to vector<16x1xf32>
    %42 = arith.mulf %38, %41 : vector<16x1xf32>
    %43 = arith.mulf %40, %40 : vector<16x1xf32>
    %44 = arith.subf %42, %43 : vector<16x1xf32>
    %45 = vector.broadcast %40 : vector<16x1xf32> to vector<16x128xf32>
    %46 = arith.subf %31, %45 : vector<16x128xf32>
    %cst_24 = arith.constant 9.99999974E-6 : f32
    %47 = vector.broadcast %cst_24 : f32 to vector<16x1xf32>
    %48 = arith.addf %44, %47 : vector<16x1xf32>
    %49 = math.rsqrt %48 : vector<16x1xf32>
    %50 = vector.broadcast %49 : vector<16x1xf32> to vector<16x128xf32>
    %51 = arith.mulf %46, %50 : vector<16x128xf32>
    %52 = vector.broadcast %32 : vector<1x128xf32> to vector<16x128xf32>
    %53 = arith.mulf %51, %52 : vector<16x128xf32>
    %54 = vector.broadcast %33 : vector<1x128xf32> to vector<16x128xf32>
    %55 = arith.addf %53, %54 : vector<16x128xf32>
    %c0_25 = arith.constant 0 : index
    %c0_26 = arith.constant 0 : index
    %56 = vector.load %arg12[%c0_25, %c0_26] : memref<16x256xf32, #tpu.memory_space<vmem>>, vector<16x128xf32>
    tpu.vector_store %arg12[%c0_25, %c0_26], %55 {strides = array<i32>} : memref<16x256xf32, #tpu.memory_space<vmem>>, vector<16x128xf32>,
    %c0_27 = arith.constant 0 : index
    %c128 = arith.constant 128 : index
    %57 = vector.load %arg12[%c0_27, %c128] : memref<16x256xf32, #tpu.memory_space<vmem>>, vector<16x128xf32>
    tpu.vector_store %arg12[%c0_27, %c128], %1 {strides = array<i32>} : memref<16x256xf32, #tpu.memory_space<vmem>>, vector<16x128xf32>,
    %c0_28 = arith.constant 0 : index
    %c0_29 = arith.constant 0 : index
    %58 = vector.load %arg12[%c0_28, %c0_29] : memref<16x256xf32, #tpu.memory_space<vmem>>, vector<16x256xf32>
    %c0_30 = arith.constant 0 : index
    %c0_31 = arith.constant 0 : index
    %59 = vector.load %arg7[%c0_30, %c0_31] : memref<256x128xf32, #tpu.memory_space<vmem>>, vector<256x128xf32>
    %cst_32 = arith.constant dense<0.000000e+00> : vector<16x128xf32>
    %60 = tpu.matmul %58, %59, %cst_32 {dimension_numbers = #tpu.dot_dimension_numbers<[1], [0], [0], [1], [0, 0, 1, 1], [], []>} : vector<16x256xf32>, vector<256x128xf32>, vector<16x128xf32> -> vector<16x128xf32>
    %c0_33 = arith.constant 0 : index
    %c0_34 = arith.constant 0 : index
    %61 = vector.load %arg8[%c0_33, %c0_34] : memref<1x128xf32, #tpu.memory_space<vmem>>, vector<1x128xf32>
    %62 = vector.broadcast %61 : vector<1x128xf32> to vector<16x128xf32>
    %63 = arith.addf %60, %62 : vector<16x128xf32>
    %64 = arith.addf %31, %63 : vector<16x128xf32>
    %c0_35 = arith.constant 0 : index
    %c0_36 = arith.constant 0 : index
    %65 = vector.load %arg11[%c0_35, %c0_36] : memref<16x128xf32, #tpu.memory_space<vmem>>, vector<16x128xf32>
    tpu.vector_store %arg11[%c0_35, %c0_36], %64 {strides = array<i32>} : memref<16x128xf32, #tpu.memory_space<vmem>>, vector<16x128xf32>,
    return
  }
  func.func @transform_0(%arg0: i32) -> (i32, i32) {
    %c0_i32 = arith.constant 0 : i32
    %c0_i32_0 = arith.constant 0 : i32
    return %arg0, %c0_i32 : i32, i32
  }
  func.func @transform_1(%arg0: i32) -> (i32, i32) {
    %c0_i32 = arith.constant 0 : i32
    %c0_i32_0 = arith.constant 0 : i32
    return %arg0, %c0_i32 : i32, i32
  }
  func.func @transform_2(%arg0: i32) -> (i32, i32) {
    %c0_i32 = arith.constant 0 : i32
    %c0_i32_0 = arith.constant 0 : i32
    %c0_i32_1 = arith.constant 0 : i32
    return %c0_i32, %c0_i32_0 : i32, i32
  }
  func.func @transform_3(%arg0: i32) -> (i32, i32) {
    %c0_i32 = arith.constant 0 : i32
    %c0_i32_0 = arith.constant 0 : i32
    %c0_i32_1 = arith.constant 0 : i32
    return %c0_i32, %c0_i32_0 : i32, i32
  }
  func.func @transform_4(%arg0: i32) -> (i32, i32) {
    %c0_i32 = arith.constant 0 : i32
    %c0_i32_0 = arith.constant 0 : i32
    %c0_i32_1 = arith.constant 0 : i32
    return %c0_i32, %c0_i32_0 : i32, i32
  }
  func.func @transform_5(%arg0: i32) -> (i32, i32) {
    %c0_i32 = arith.constant 0 : i32
    %c0_i32_0 = arith.constant 0 : i32
    %c0_i32_1 = arith.constant 0 : i32
    return %c0_i32, %c0_i32_0 : i32, i32
  }
  func.func @transform_6(%arg0: i32) -> (i32, i32) {
    %c0_i32 = arith.constant 0 : i32
    %c0_i32_0 = arith.constant 0 : i32
    %c0_i32_1 = arith.constant 0 : i32
    return %c0_i32, %c0_i32_0 : i32, i32
  }
  func.func @transform_7(%arg0: i32) -> (i32, i32) {
    %c0_i32 = arith.constant 0 : i32
    %c0_i32_0 = arith.constant 0 : i32
    %c0_i32_1 = arith.constant 0 : i32
    return %c0_i32, %c0_i32_0 : i32, i32
  }
  func.func @transform_8(%arg0: i32) -> (i32, i32) {
    %c0_i32 = arith.constant 0 : i32
    %c0_i32_0 = arith.constant 0 : i32
    %c0_i32_1 = arith.constant 0 : i32
    return %c0_i32, %c0_i32_0 : i32, i32
  }
  func.func @transform_9(%arg0: i32) -> (i32, i32) {
    %c0_i32 = arith.constant 0 : i32
    %c0_i32_0 = arith.constant 0 : i32
    %c0_i32_1 = arith.constant 0 : i32
    return %c0_i32, %c0_i32_0 : i32, i32
  }
  func.func @transform_10(%arg0: i32) -> (i32, i32) {
    %c0_i32 = arith.constant 0 : i32
    %c0_i32_0 = arith.constant 0 : i32
    return %arg0, %c0_i32 : i32, i32
  }
}

</mosaic_0001>

<bundles_post_ra>
// kernel: tpu_custom_call.1
= control target key start
LH: loop header
LB: loop body
LE: loop exit
PB: predicated region body
PF: predicated region fallthrough
CT: control target
= control target key end

     0   :  { %15 = vsyncpa [#allocation4], 0  ;;  %s788_s0 = inlined_call_operand.hbm [shape: f32[16,128], index: 0, kind: input, shape index: {}]   ;;  %s789_s1 = inlined_call_operand.hbm [shape: f32[16,128], index: 1, kind: input, shape index: {}]   ;;  %s790_s2 = inlined_call_operand.hbm [shape: f32[128,128], index: 2, kind: input, shape index: {}]   ;;  %s791_s3 = inlined_call_operand.vmem [shape: f32[1,128], index: 3, kind: input, shape index: {}]   ;;  %s792_s4 = inlined_call_operand.vmem [shape: f32[1,128], index: 4, kind: input, shape index: {}]   ;;  %s793_s5 = inlined_call_operand.vmem [shape: f32[1,128], index: 5, kind: input, shape index: {}]   ;;  %s794_s6 = inlined_call_operand.hbm [shape: f32[256,128], index: 6, kind: input, shape index: {}]   ;;  %s795_s7 = inlined_call_operand.vmem [shape: f32[1,128], index: 7, kind: input, shape index: {}]   ;;  %s796_s8 = inlined_call_operand.vmem [shape: f32[1,128], index: 8, kind: input, shape index: {}]   ;;  %s797_s9 = inlined_call_operand.vmem [shape: f32[1,128], index: 9, kind: input, shape index: {}]   ;;  %s798_s10 = inlined_call_operand.hbm [shape: f32[16,128], index: 10, kind: output, shape index: {}]  }
   0x1   :  { %16 = vsyncpa [#allocation7], 0 }
   0x2   :  { %17 = vsyncpa [#allocation10], 0 }
   0x3   :  { %18 = vsyncpa [#allocation5], 0  ;;  %s650_s13 = smov [#allocation6]   ;;  %s651_s15 = smov [#allocation3]  }
   0x4   :  { %s36_s14 = sshll.u32 %s650_s13, 4  ;;  %s24_s16 = sshll.u32 %s651_s15, 4  ;;  %s37_s14 = int_to_ptr.vmem [resolvable:$true] %s36_s14  ;;  %s25_s16 = int_to_ptr.vmem [resolvable:$true] %s24_s16 }
   0x5   :  { %s550_s17 = scalar_lea.vmem %s37_s14, 256  ;;  %p555_p1 = scmp.lt.s32.totalorder %s37_s14, %s37_s14 }
   0x6   :  { %p551_p0 = scmp.ne.s32.totalorder %s37_s14, %s550_s17  ;;  %p556_p2 = scmp.lt.s32.totalorder %s550_s17, %s550_s17 }
   0x8   :  { %p557_p3 = por %p556_p2, %p555_p1 }
   0xa   :  { %p558_p4 = pnand %p557_p3, %p551_p0 }
   0xc   :  { %561 = shalt.err (!%p558_p4)
}
   0xd   :  { %s652_s18 = smov 128   ;;  %s653_s19 = smov 8  }
   0xe   :  { %42 = dma.hbm_to_vmem [thread:$0]  %s789_s1, 256, %s37_s14, [#allocation7], %s652_s18, %s652_s18, %s653_s19  }
   0xf   :  { %s570_s22 = scalar_lea.vmem %s25_s16, 256  ;;  %p575_p6 = scmp.lt.s32.totalorder %s25_s16, %s25_s16 }
  0x10   :  { %p571_p5 = scmp.ne.s32.totalorder %s25_s16, %s570_s22  ;;  %p576_p7 = scmp.lt.s32.totalorder %s570_s22, %s570_s22 }
  0x12   :  { %p577_p8 = por %p576_p7, %p575_p6 }
  0x14   :  { %p578_p9 = pnand %p577_p8, %p571_p5 }
  0x16   :  { %581 = shalt.err (!%p578_p9)
}
  0x17   :  { %30 = dma.hbm_to_vmem [thread:$0]  %s788_s0, 256, %s25_s16, [#allocation4], %s652_s18, %s652_s18, %s653_s19  }
  0x18   :  { %s654_s25 = smov [#allocation8]   ;;  %s655_s27 = smov [#allocation9]  }
  0x19   :  { %s48_s26 = sshll.u32 %s654_s25, 4  ;;  %s66_s28 = sshll.u32 %s655_s27, 4  ;;  %s49_s26 = int_to_ptr.vmem [resolvable:$true] %s48_s26  ;;  %s67_s28 = int_to_ptr.vmem [resolvable:$true] %s66_s28 }
  0x1a   :  { %s590_s1 = scalar_lea.vmem %s49_s26, 2048  ;;  %p595_p11 = scmp.lt.s32.totalorder %s49_s26, %s49_s26 }
  0x1b   :  { %p591_p10 = scmp.ne.s32.totalorder %s49_s26, %s590_s1  ;;  %p596_p12 = scmp.lt.s32.totalorder %s590_s1, %s590_s1 }
  0x1d   :  { %p597_p13 = por %p596_p12, %p595_p11 }
  0x1f   :  { %p598_p0 = pnand %p597_p13, %p591_p10 }
  0x21   :  { %601 = shalt.err (!%p598_p0)
}
  0x22   :  { %54 = dma.hbm_to_vmem [thread:$0]  %s790_s2, 2048, %s49_s26, [#allocation7], %s652_s18, %s652_s18, %s653_s19  }
  0x23   :  { %s610_s0 = scalar_lea.vmem %s67_s28, 4096  ;;  %p615_p2 = scmp.lt.s32.totalorder %s67_s28, %s67_s28 }
  0x24   :  { %p611_p1 = scmp.ne.s32.totalorder %s67_s28, %s610_s0  ;;  %p616_p3 = scmp.lt.s32.totalorder %s610_s0, %s610_s0 }
  0x26   :  { %p617_p4 = por %p616_p3, %p615_p2 }
  0x28   :  { %p618_p5 = pnand %p617_p4, %p611_p1 }
  0x2a   :  { %621 = shalt.err (!%p618_p5)
}
  0x2b   :  { %72 = dma.hbm_to_vmem [thread:$0]  %s794_s6, 4096, %s67_s28, [#allocation10], %s652_s18, %s652_s18, %s653_s19  }
  0x2c   :  { %642 = dma.done.wait [#allocation4], 256  }
  0x2d   :  { %643 = vsyncadd [#allocation4], 4294967040 }
  0x2e   :  { %644 = dma.done.wait [#allocation7], 2304  }
  0x2f   :  { %645 = vsyncadd [#allocation7], 4294964992 }
  0x30   :  { %646 = dma.done.wait [#allocation10], 4096  }
  0x31   :  { %647 = vsyncadd [#allocation10], 4294963200  ;;  %v736_v0 = vld [vmem:[#allocation3] sm:$0xff]  ;;  %v738_v1 = vld [vmem:[#allocation3 + $0x8] sm:$0xff] }
  0x32   :  { %97 = vadd.xlane.f32.xlu0 %v736_v0  ;;  %v101_v2 = vmul.f32 %v736_v0, %v736_v0  ;;  %v102_v3 = vmul.f32 %v738_v1, %v738_v1  ;;  %v154_v4 = vld [vmem:[#allocation8 + $0x78] sm:$0xff]  ;;  %v153_v5 = vld [vmem:[#allocation8 + $0x70] sm:$0xff]  ;;  %v152_v6 = vld [vmem:[#allocation8 + $0x68] sm:$0xff] }
  0x33   :  { %492 = vmatprep.subr.mxu0 %v154_v4  ;;  %v151_v7 = vld [vmem:[#allocation8 + $0x60] sm:$0xff]  ;;  %v150_v8 = vld [vmem:[#allocation8 + $0x58] sm:$0xff]  ;;  %v149_v9 = vld [vmem:[#allocation8 + $0x50] sm:$0xff] }
  0x34   :  { %103 = vadd.xlane.f32.xlu1 %v101_v2  ;;  %493 = vmatpush3.msra.mxu0 %v154_v4  ;;  %v148_v10 = vld [vmem:[#allocation8 + $0x48] sm:$0xff]  ;;  %v147_v11 = vld [vmem:[#allocation8 + $0x40] sm:$0xff]  ;;  %v146_v12 = vld [vmem:[#allocation8 + $0x38] sm:$0xff] }
  0x35   :  { %494 = vmatprep.subr.mxu0 %v153_v5  ;;  %v145_v13 = vld [vmem:[#allocation8 + $0x30] sm:$0xff]  ;;  %v144_v14 = vld [vmem:[#allocation8 + $0x28] sm:$0xff]  ;;  %v143_v15 = vld [vmem:[#allocation8 + $0x20] sm:$0xff] }
  0x36   :  { %99 = vadd.xlane.f32.xlu0 %v738_v1  ;;  %495 = vmatpush3.msra.mxu0 %v153_v5  ;;  %v142_v16 = vld [vmem:[#allocation8 + $0x18] sm:$0xff]  ;;  %v141_v17 = vld [vmem:[#allocation8 + $0x10] sm:$0xff]  ;;  %v140_v18 = vld [vmem:[#allocation8 + $0x8] sm:$0xff] }
  0x37   :  { %496 = vmatprep.subr.mxu0 %v152_v6  ;;  %v139_v19 = vld [vmem:[#allocation8] sm:$0xff]  ;;  %v324_v46 = vld [vmem:[#allocation9 + $0xf8] sm:$0xff]  ;;  %v323_v48 = vld [vmem:[#allocation9 + $0xf0] sm:$0xff] }
  0x38   :  { %105 = vadd.xlane.f32.xlu1 %v102_v3  ;;  %497 = vmatpush3.msra.mxu0 %v152_v6  ;;  %v430_v36 = vld [vmem:[%s792_s4] ss:$0 sm:$0xff]  ;;  %v308_v47 = vld [vmem:[#allocation9 + $0x78] sm:$0xff]  ;;  %v307_v49 = vld [vmem:[#allocation9 + $0x70] sm:$0xff] }
  0x39   :  { %498 = vmatprep.subr.mxu0 %v151_v7  ;;  %v431_v38 = vld [vmem:[%s793_s5] ss:$0 sm:$0xff]  ;;  %454 = vmatprep.subr.mxu1 %v324_v46  ;;  %v322_v59 = vld [vmem:[#allocation9 + $0xe8] sm:$0xff]  ;;  %v320_v63 = vld [vmem:[#allocation9 + $0xd8] sm:$0xff] }
  0x3a   :  { %499 = vmatpush3.msra.mxu0 %v151_v7  ;;  %455 = vmatpush3.msra.mxu1 %v308_v47  ;;  %v432_v54 = vld [vmem:[%s791_s3] ss:$0 sm:$0xff]  ;;  %v306_v60 = vld [vmem:[#allocation9 + $0x68] sm:$0xff]  ;;  %v303_v2 = vld [vmem:[#allocation9 + $0x50] sm:$0xff] }
  0x3b   :  { %500 = vmatprep.subr.mxu0 %v150_v8  ;;  %456 = vmatprep.subr.mxu1 %v323_v48  ;;  %v321_v61 = vld [vmem:[#allocation9 + $0xe0] sm:$0xff]  ;;  %v318_v3 = vld [vmem:[#allocation9 + $0xc8] sm:$0xff]  ;;  %v316_v7 = vld [vmem:[#allocation9 + $0xb8] sm:$0xff] }
  0x3c   :  { %501 = vmatpush3.msra.mxu0 %v150_v8  ;;  %457 = vmatpush3.msra.mxu1 %v307_v49  ;;  %v305_v62 = vld [vmem:[#allocation9 + $0x60] sm:$0xff]  ;;  %v302_v4 = vld [vmem:[#allocation9 + $0x48] sm:$0xff]  ;;  %v300_v8 = vld [vmem:[#allocation9 + $0x38] sm:$0xff] }
  0x3d   :  { %502 = vmatprep.subr.mxu0 %v149_v9  ;;  %458 = vmatprep.subr.mxu1 %v322_v59  ;;  %v317_v5 = vld [vmem:[#allocation9 + $0xc0] sm:$0xff]  ;;  %v94_v47 = vld [vmem:[#allocation6 + $0x8] sm:$0xff] }
  0x3e   :  { %503 = vmatpush3.msra.mxu0 %v149_v9  ;;  %459 = vmatpush3.msra.mxu1 %v306_v60  ;;  %v301_v6 = vld [vmem:[#allocation9 + $0x40] sm:$0xff]  ;;  %v315_v9 = vld [vmem:[#allocation9 + $0xb0] sm:$0xff] }
  0x3f   :  { %504 = vmatprep.subr.mxu0 %v148_v10  ;;  %460 = vmatprep.subr.mxu1 %v321_v61 }
  0x40   :  { %505 = vmatpush3.msra.mxu0 %v148_v10  ;;  %461 = vmatpush3.msra.mxu1 %v305_v62  ;;  %v299_v10 = vld [vmem:[#allocation9 + $0x30] sm:$0xff] }
  0x41   :  { %506 = vmatprep.subr.mxu0 %v147_v11  ;;  %462 = vmatprep.subr.mxu1 %v320_v63 }
  0x42   :  { %507 = vmatpush3.msra.mxu0 %v147_v11  ;;  %v314_v11 = vld [vmem:[#allocation9 + $0xa8] sm:$0xff] }
  0x43   :  { %508 = vmatprep.subr.mxu0 %v146_v12 }
  0x44   :  { %509 = vmatpush3.msra.mxu0 %v146_v12  ;;  %v298_v12 = vld [vmem:[#allocation9 + $0x28] sm:$0xff] }
  0x45   :  { %510 = vmatprep.subr.mxu0 %v145_v13 }
  0x46   :  { %511 = vmatpush3.msra.mxu0 %v145_v13  ;;  %v313_v13 = vld [vmem:[#allocation9 + $0xa0] sm:$0xff] }
  0x47   :  { %512 = vmatprep.subr.mxu0 %v144_v14 }
  0x48   :  { %513 = vmatpush3.msra.mxu0 %v144_v14  ;;  %v297_v14 = vld [vmem:[#allocation9 + $0x20] sm:$0xff] }
  0x49   :  { %514 = vmatprep.subr.mxu0 %v143_v15 }
  0x4a   :  { %515 = vmatpush3.msra.mxu0 %v143_v15  ;;  %v312_v15 = vld [vmem:[#allocation9 + $0x98] sm:$0xff] }
  0x4b   :  { %516 = vmatprep.subr.mxu0 %v142_v16 }
  0x4c   :  { %517 = vmatpush3.msra.mxu0 %v142_v16  ;;  %v93_v16 = vld [vmem:[#allocation6] sm:$0xff] }
  0x4d   :  { %518 = vmatprep.subr.mxu0 %v141_v17  ;;  %396 = vmatprep.mubr.f32.mxu1 %v93_v16 }
  0x4e   :  { %519 = vmatpush3.msra.mxu0 %v141_v17  ;;  %v296_v17 = vld [vmem:[#allocation9 + $0x18] sm:$0xff] }
  0x4f   :  { %520 = vmatprep.subr.mxu0 %v140_v18 }
  0x50   :  { %521 = vmatpush3.msra.mxu0 %v140_v18  ;;  %v311_v18 = vld [vmem:[#allocation9 + $0x90] sm:$0xff] }
  0x51   :  { %522 = vmatprep.subr.mxu0 %v139_v19 }
  0x52   :  { %523 = vmatpush3.msra.mxu0 %v139_v19  ;;  %v295_v19 = vld [vmem:[#allocation9 + $0x10] sm:$0xff] }
  0xbb   :  { %v98_v20 = vpop.xlane.xlu0 %97 }
  0xbc   :  { %v107_v21 = vmul.f32 0.03125, %v98_v20  ;;  %v310_v20 = vld [vmem:[#allocation9 + $0x88] sm:$0xff] }
  0xbd   :  { %v104_v22 = vpop.xlane.xlu1 %103 }
  0xbe   :  { %v111_v23 = vmul.f32 %v107_v21, %v107_v21  ;;  %v109_v24 = vmul.f32 0.03125, %v104_v22  ;;  %v115_v34 = vsub.f32 %v736_v0, %v107_v21  ;;  %v294_v21 = vld [vmem:[#allocation9 + $0x8] sm:$0xff]  ;;  %v309_v22 = vld [vmem:[#allocation9 + $0x80] sm:$0xff] }
  0xbf   :  { %v100_v25 = vpop.xlane.xlu0 %99 }
  0xc0   :  { %v113_v26 = vsub.f32 %v109_v24, %v111_v23  ;;  %v108_v27 = vmul.f32 0.03125, %v100_v25  ;;  %v293_v23 = vld [vmem:[#allocation9] sm:$0xff] }
  0xc1   :  { %v106_v28 = vpop.xlane.xlu1 %105 }
  0xc2   :  { %v117_v29 = vadd.f32 1e-05, %v113_v26  ;;  %v112_v30 = vmul.f32 %v108_v27, %v108_v27  ;;  %v110_v31 = vmul.f32 0.03125, %v106_v28  ;;  %v116_v39 = vsub.f32 %v738_v1, %v108_v27 }
  0xc4   :  { %534 = vrsqrt.f32 %v117_v29  ;;  %v114_v32 = vsub.f32 %v110_v31, %v112_v30 }
  0xc6   :  { %v118_v33 = vadd.f32 1e-05, %v114_v32 }
  0xc8   :  { %536 = vrsqrt.f32 %v118_v33 }
  0xd1   :  { %v535_v35 = vpop.eup %534 }
  0xd2   :  { %v121_v37 = vmul.f32 %v535_v35, %v115_v34 }
  0xd4   :  { %v129_v40 = vmul.f32 %v430_v36, %v121_v37 }
  0xd5   :  { %v537_v41 = vpop.eup %536 }
  0xd6   :  { %v122_v42 = vmul.f32 %v537_v41, %v116_v39  ;;  %v137_v43 = vadd.f32 %v431_v38, %v129_v40  ;;  %v433_v40 = vld [vmem:[%s796_s8] ss:$0 sm:$0xff] }
  0xd8   :  { %v130_v44 = vmul.f32 %v430_v36, %v122_v42  ;;  %524 = vmatprep.mubr.f32.mxu0 %v137_v43  ;;  %v434_v42 = vld [vmem:[%s797_s9] ss:$0 sm:$0xff]  ;;  %s656_s9 = smov [#allocation11]  }
  0xd9   :  { %s416_s21 = sshll.u32 %s656_s9, 4  ;;  %s417_s21 = int_to_ptr.vmem [resolvable:$true] %s416_s21 }
  0xda   :  { %v138_v45 = vadd.f32 %v431_v38, %v130_v44  ;;  %s622_s22 = scalar_lea.vmem %s417_s21, 256  ;;  %p627_p7 = scmp.lt.s32.totalorder %s417_s21, %s417_s21 }
  0xdb   :  { %p623_p6 = scmp.ne.s32.totalorder %s417_s21, %s622_s22  ;;  %p628_p8 = scmp.lt.s32.totalorder %s622_s22, %s622_s22 }
  0xdc   :  { %525 = vmatmul.mubr.f32.vlgmr.msra.gmra.mxu0 %v138_v45 }
  0xdd   :  { %p629_p9 = por %p628_p8, %p627_p7 }
  0xdf   :  { %p630_p10 = pnand %p629_p9, %p623_p6 }
 0x19c   :  { %v526_v50 = vpop.f32.mrf.mxu0 }
 0x19d   :  { %v231_v52 = vadd.f32 %v526_v50, %v738_v1  ;;  %v319_v1 = vld [vmem:[#allocation9 + $0xd0] sm:$0xff] }
 0x19e   :  { %v221_v51 = vpop.f32.mrf.mxu0 }
 0x19f   :  { %v230_v53 = vadd.f32 %v221_v51, %v736_v0  ;;  %v761_v56 = vadd.f32 %v432_v54, %v231_v52  ;;  %v304_v0 = vld [vmem:[#allocation9 + $0x58] sm:$0xff]  ;;  %v435_v52 = vld [vmem:[%s795_s7] ss:$0 sm:$0xff] }
 0x1a0   :  { %463 = vmatpush3.msra.mxu1 %v304_v0 }
 0x1a1   :  { %v759_v55 = vadd.f32 %v432_v54, %v230_v53  ;;  %v248_v58 = vmul.f32 %v761_v56, %v761_v56  ;;  %464 = vmatprep.subr.mxu1 %v319_v1 }
 0x1a2   :  { %465 = vmatpush3.msra.mxu1 %v303_v2 }
 0x1a3   :  { %243 = vadd.xlane.f32.xlu0 %v759_v55  ;;  %v247_v57 = vmul.f32 %v759_v55, %v759_v55  ;;  %466 = vmatprep.subr.mxu1 %v318_v3 }
 0x1a4   :  { %467 = vmatpush3.msra.mxu1 %v302_v4 }
 0x1a5   :  { %249 = vadd.xlane.f32.xlu1 %v247_v57  ;;  %468 = vmatprep.subr.mxu1 %v317_v5 }
 0x1a6   :  { %469 = vmatpush3.msra.mxu1 %v301_v6 }
 0x1a7   :  { %245 = vadd.xlane.f32.xlu0 %v761_v56  ;;  %470 = vmatprep.subr.mxu1 %v316_v7 }
 0x1a8   :  { %471 = vmatpush3.msra.mxu1 %v300_v8 }
 0x1a9   :  { %251 = vadd.xlane.f32.xlu1 %v248_v58  ;;  %472 = vmatprep.subr.mxu1 %v315_v9 }
 0x1aa   :  { %473 = vmatpush3.msra.mxu1 %v299_v10 }
 0x1ab   :  { %474 = vmatprep.subr.mxu1 %v314_v11 }
 0x1ac   :  { %475 = vmatpush3.msra.mxu1 %v298_v12 }
 0x1ad   :  { %476 = vmatprep.subr.mxu1 %v313_v13 }
 0x1ae   :  { %477 = vmatpush3.msra.mxu1 %v297_v14 }
 0x1af   :  { %478 = vmatprep.subr.mxu1 %v312_v15 }
 0x1b0   :  { %479 = vmatpush3.msra.mxu1 %v296_v17 }
 0x1b1   :  { %480 = vmatprep.subr.mxu1 %v311_v18 }
 0x1b2   :  { %481 = vmatpush3.msra.mxu1 %v295_v19 }
 0x1b3   :  { %482 = vmatprep.subr.mxu1 %v310_v20 }
 0x1b4   :  { %483 = vmatpush3.msra.mxu1 %v294_v21 }
 0x1b5   :  { %484 = vmatprep.subr.mxu1 %v309_v22 }
 0x1b6   :  { %485 = vmatpush3.msra.mxu1 %v293_v23 }
 0x22c   :  { %v244_v24 = vpop.xlane.xlu0 %243 }
 0x22d   :  { %v253_v25 = vmul.f32 0.03125, %v244_v24 }
 0x22e   :  { %v250_v26 = vpop.xlane.xlu1 %249 }
 0x22f   :  { %v257_v27 = vmul.f32 %v253_v25, %v253_v25  ;;  %v255_v28 = vmul.f32 0.03125, %v250_v26  ;;  %v261_v38 = vsub.f32 %v759_v55, %v253_v25 }
 0x230   :  { %v246_v29 = vpop.xlane.xlu0 %245 }
 0x231   :  { %v259_v30 = vsub.f32 %v255_v28, %v257_v27  ;;  %v254_v31 = vmul.f32 0.03125, %v246_v29 }
 0x232   :  { %v252_v32 = vpop.xlane.xlu1 %251 }
 0x233   :  { %v263_v33 = vadd.f32 1e-05, %v259_v30  ;;  %v258_v34 = vmul.f32 %v254_v31, %v254_v31  ;;  %v256_v35 = vmul.f32 0.03125, %v252_v32  ;;  %v262_v43 = vsub.f32 %v761_v56, %v254_v31 }
 0x235   :  { %538 = vrsqrt.f32 %v263_v33  ;;  %v260_v36 = vsub.f32 %v256_v35, %v258_v34 }
 0x237   :  { %v264_v37 = vadd.f32 1e-05, %v260_v36 }
 0x239   :  { %540 = vrsqrt.f32 %v264_v37 }
 0x242   :  { %v539_v39 = vpop.eup %538 }
 0x243   :  { %v267_v41 = vmul.f32 %v539_v39, %v261_v38 }
 0x245   :  { %v275_v44 = vmul.f32 %v433_v40, %v267_v41 }
 0x246   :  { %v541_v45 = vpop.eup %540 }
 0x247   :  { %v283_v46 = vadd.f32 %v434_v42, %v275_v44  ;;  %v268_v48 = vmul.f32 %v541_v45, %v262_v43 }
 0x249   :  { %397 = vmatmul.mubr.f32.vlgmr.msra.gmra.mxu1 %v283_v46  ;;  %v276_v49 = vmul.f32 %v433_v40, %v268_v48 }
 0x24a   :  { %401 = vmatprep.mubr.f32.mxu1 %v94_v47 }
 0x24b   :  { %v284_v50 = vadd.f32 %v434_v42, %v276_v49 }
 0x24d   :  { %402 = vmatmul.mubr.f32.gmra.mxu1 %v284_v50 }
 0x309   :  { %v486_v51 = vpop.f32.mrf.mxu1 }
 0x30b   :  { %v487_v53 = vpop.f32.mrf.mxu1 }
 0x30c   :  { %v488_v54 = vadd.f32 %v487_v53, %v486_v51 }
 0x30d   :  { %v489_v57 = vpop.f32.mrf.mxu1 }
 0x30e   :  { %v399_v58 = vadd.f32 %v488_v54, %v435_v52 }
 0x30f   :  { %v490_v59 = vpop.f32.mrf.mxu1 }
 0x310   :  { %v407_v60 = vadd.f32 %v399_v58, %v759_v55  ;;  %v491_v61 = vadd.f32 %v490_v59, %v489_v57 }
 0x312   :  { %409 = vst [vmem:[#allocation11] sm:$0xff] %v407_v60  ;;  %v404_v62 = vadd.f32 %v491_v61, %v435_v52 }
 0x314   :  { %v408_v63 = vadd.f32 %v404_v62, %v761_v56 }
 0x316   :  { %410 = vst [vmem:[#allocation11 + $0x8] sm:$0xff] %v408_v63 }
 0x317   :  { %633 = shalt.err (!%p630_p10)
}
 0x318   :  { %422 = dma.vmem_to_hbm [thread:$0]  %s417_s21, 256, %s798_s10, [#allocation5], %s652_s18, %s652_s18, %s653_s19  }
 0x319   :  { %648 = dma.done.wait [#allocation5], 256  }
 0x31a   :  { %649 = vsyncadd [#allocation5], 4294967040 }
 0x31b   :  { %426 = vsyncpa [#allocation4], 1 }
 0x31c   :  { %427 = vsyncpa [#allocation7], 1 }
 0x31d   :  { %428 = vsyncpa [#allocation10], 1 }
 0x31e   :  { %429 = vsyncpa [#allocation5], 1 }

</bundles_post_ra>
